<compile_context>
chip_gen: v7x
topology: tpu7x:2x2x1
jax: 0.10.0
libtpu: 0.0.40
codegen_flags: <defaults>
</compile_context>

<pallas_src>
import functools

import jax
import jax.numpy as jnp
from jax.experimental import pallas as pl
from jax.experimental.pallas import tpu as pltpu


def _edge_enhancer_kernel(x_ref, mask_ref, w_ref, bias_ref, o_ref, *, W, approx_sigmoid):
    # x_ref   : (Nb, C, H*W)  input tile, lane-dense flattened spatial axis
    # mask_ref: (4, H*W)      f32 {0,1} masks: [keep_left, keep_right, keep_up, keep_down]
    # w_ref   : (C, C)        1x1 conv weight with BN scale folded in (out_ch, in_ch)
    # bias_ref: (C, 1)        folded BN bias
    # o_ref   : (Nb, C, H*W)  output tile
    x = x_ref[...].astype(jnp.float32)
    Nb, C, HW = x.shape

    m = mask_ref[...]                 # (4, HW) f32, shared across batch & channel
    keep_l = m[0:1][None]             # (1, 1, HW) -> broadcasts over (Nb, C)
    keep_r = m[1:2][None]
    keep_u = m[2:3][None]
    keep_d = m[3:4][None]

    # --- AvgPool2d(3, stride=1, padding=1), count_include_pad=True (/9 everywhere) ---
    # Separable 3-tap sums: neighbour taps are cyclic lane rolls; wrapped elements are
    # zeroed by the precomputed boundary masks (reproduces the zero padding).  Negative
    # shifts are expressed as (HW - k) rolls.
    left = pltpu.roll(x, shift=1, axis=2) * keep_l
    right = pltpu.roll(x, shift=HW - 1, axis=2) * keep_r
    hsum = x + left + right
    up = pltpu.roll(hsum, shift=W, axis=2) * keep_u
    down = pltpu.roll(hsum, shift=HW - W, axis=2) * keep_d
    pooled = (hsum + up + down) * (1.0 / 9.0)

    edge = x - pooled

    w = w_ref[...].astype(jnp.float32)        # (C, C)
    bias = bias_ref[...].astype(jnp.float32)  # (C, 1)

    def _sigmoid(y):
        e = jnp.exp(-y)
        if approx_sigmoid:
            return pl.reciprocal(1.0 + e, approx=True)   # reciprocal on the EUP slot
        return 1.0 / (1.0 + e)

    if C < 8:
        # Tiny channel mix: C broadcast FMAs on the VPU (the MXU would be nearly empty).
        y = None
        for c in range(C):
            contrib = w[:, c:c + 1][None, :, :] * edge[:, c:c + 1, :]
            y = contrib if y is None else y + contrib
        y = y + bias[None, :, :]
        o_ref[...] = (x + _sigmoid(y)).astype(o_ref.dtype)
    else:
        # MXU path: one lane-dense (C,C)x(C,HW) matmul per batch element; the
        # bias/sigmoid/residual epilogue is fused into the per-n output write so no
        # extra stacked (Nb, C, HW) f32 temporary is materialized.
        for n in range(Nb):
            y_n = jnp.dot(w, edge[n], preferred_element_type=jnp.float32) + bias
            o_ref[n] = (x[n] + _sigmoid(y_n)).astype(o_ref.dtype)


def edge_enhancer(x, conv_w, bn_scale, bn_bias, *, block_n=None,
                  io_dtype=None, approx_sigmoid=False):
    """EdgeEnhancer forward.

    x        : (N, C, H, W)
    conv_w   : (C, C)        1x1 conv weight (out_ch, in_ch), no bias
    bn_scale : (C,) or (C,1) gamma / sqrt(running_var + eps)   (BatchNorm2d eval)
    bn_bias  : (C,) or (C,1) beta - running_mean * bn_scale
    io_dtype : HBM I/O dtype (default: x.dtype).  jnp.bfloat16 halves HBM traffic for
               this bandwidth-bound kernel; in-kernel compute stays f32.
    """
    N, C, H, W = x.shape
    HW = H * W
    io_dtype = x.dtype if io_dtype is None else jnp.dtype(io_dtype)

    # Fold BN(eval) scale into the conv weight (per output channel).
    scale = jnp.reshape(bn_scale, (C, 1)).astype(jnp.float32)
    bias = jnp.reshape(bn_bias, (C, 1)).astype(jnp.float32)
    w_scaled = scale * conv_w.astype(jnp.float32)

    # Zero-padding boundary masks, identical for every (batch, channel): 1.0 where the
    # rolled neighbour is a real pixel, 0.0 where the roll would wrap around.
    lane = jnp.arange(HW, dtype=jnp.int32)
    col, row = lane % W, lane // W
    masks = jnp.stack([col > 0, col < W - 1, row > 0, row < H - 1]).astype(jnp.float32)

    # Lane-dense layout: flatten spatial axes (free, row-major contiguous in HBM).
    x_flat = x.reshape(N, C, HW).astype(io_dtype)

    # --- batch-folding heuristic ----------------------------------------------------
    # VMEM footprint per batch element: double-buffered in + out tiles in io dtype plus
    # ~8 full-size f32 temporaries (x, left/right, hsum, up/down, pooled, edge, y) that
    # the rolls/conv force Mosaic to materialize.  Channels occupy ceil(C/8)*8 sublanes.
    # Target ~24 MiB to stay under the explicit 32 MiB scoped-VMEM limit on all chips.
    if block_n is None:
        c_pad = -(-C // 8) * 8
        io_bytes = c_pad * HW * jnp.dtype(io_dtype).itemsize
        f32_bytes = c_pad * HW * 4
        per_batch = 4 * io_bytes + 8 * f32_bytes
        vmem_budget = 24 * 1024 * 1024
        block_n = max(1, min(N, vmem_budget // per_batch))
        if N >= 2:  # keep >= 2 grid steps so v7x's second TensorCore has work
            block_n = min(block_n, pl.cdiv(N, 2))
    grid = (pl.cdiv(N, block_n),)   # partial last block instead of shrinking block_n

    kernel = functools.partial(_edge_enhancer_kernel, W=W, approx_sigmoid=approx_sigmoid)
    out_flat = pl.pallas_call(
        kernel,
        out_shape=jax.ShapeDtypeStruct((N, C, HW), io_dtype),
        grid_spec=pltpu.PrefetchScalarGridSpec(
            num_scalar_prefetch=0,
            grid=grid,
            in_specs=[
                pl.BlockSpec((block_n, C, HW), lambda n: (n, 0, 0)),
                pl.BlockSpec((4, HW), lambda n: (0, 0)),
                pl.BlockSpec((C, C), lambda n: (0, 0)),
                pl.BlockSpec((C, 1), lambda n: (0, 0)),
            ],
            out_specs=pl.BlockSpec((block_n, C, HW), lambda n: (n, 0, 0)),
        ),
        compiler_params=pltpu.CompilerParams(
            dimension_semantics=("parallel",),
            vmem_limit_bytes=32 * 1024 * 1024,
        ),
    )(x_flat, masks, w_scaled, bias)
    return out_flat.reshape(N, C, H, W)


def _reference(x, conv_w, bn_scale, bn_bias):
    """Pure-JAX reference (exact f32 elementwise conv -> no XLA matmul-precision slack)."""
    N, C, H, W = x.shape
    xp = jnp.pad(x, ((0, 0), (0, 0), (1, 1), (1, 1)))
    pooled = jnp.zeros_like(x)
    for dy in range(3):
        for dx in range(3):
            pooled = pooled + xp[:, :, dy:dy + H, dx:dx + W]
    pooled = pooled / 9.0
    edge = x - pooled
    y = (conv_w[None, :, :, None, None] * edge[:, None, :, :, :]).sum(axis=2)
    y = y * bn_scale.reshape(1, C, 1, 1) + bn_bias.reshape(1, C, 1, 1)
    return x + jax.nn.sigmoid(y)


if __name__ == "__main__":
    key = jax.random.PRNGKey(0)

    def make_case(k, N, C, H, W):
        k_x, k_w, k_g, k_b, k_m, k_v = jax.random.split(k, 6)
        x = jax.random.normal(k_x, (N, C, H, W), dtype=jnp.float32)
        conv_w = jax.random.normal(k_w, (C, C), dtype=jnp.float32) * 0.2
        gamma = 1.0 + 0.1 * jax.random.normal(k_g, (C,), dtype=jnp.float32)
        beta = 0.1 * jax.random.normal(k_b, (C,), dtype=jnp.float32)
        run_mean = 0.1 * jax.random.normal(k_m, (C,), dtype=jnp.float32)
        run_var = jnp.abs(jax.random.normal(k_v, (C,), dtype=jnp.float32)) + 0.5
        bn_scale = gamma / jnp.sqrt(run_var + 1e-5)
        bn_bias = beta - run_mean * bn_scale
        return x, conv_w, bn_scale, bn_bias

    cases = [
        ((2, 4, 16, 16), 1e-5),   # spec shape, VPU conv path
        ((2, 4, 8, 48), 1e-5),    # non-power-of-2 W -> general boundary masks / rolls
        ((3, 4, 16, 16), 1e-5),   # odd N -> partial last grid block (cdiv grid)
        ((2, 8, 16, 16), 5e-3),   # C >= 8 -> MXU conv path (matmul-precision slack)
    ]
    for k, ((N, C, H, W), tol) in zip(jax.random.split(key, len(cases)), cases):
        x, conv_w, bn_scale, bn_bias = make_case(k, N, C, H, W)
        out = jax.block_until_ready(edge_enhancer(x, conv_w, bn_scale, bn_bias))
        ref = _reference(x, conv_w, bn_scale, bn_bias)
        assert out.shape == (N, C, H, W)
        assert jnp.allclose(out, ref, atol=tol, rtol=tol), \
            f"mismatch vs reference for shape {(N, C, H, W)}"

    print("KERNEL_OK")
</pallas_src>

<mosaic_0001>
module attributes {stable_mosaic.version = 11 : i64} {
  func.func @_edge_enhancer_kernel(%arg0: i32, %arg1: memref<1x4x256xf32, #tpu.memory_space<vmem>>, %arg2: memref<4x256xf32, #tpu.memory_space<vmem>>, %arg3: memref<4x4xf32, #tpu.memory_space<vmem>>, %arg4: memref<4x1xf32, #tpu.memory_space<vmem>>, %arg5: memref<1x4x256xf32, #tpu.memory_space<vmem>>) attributes {dimension_semantics = [#tpu.dimension_semantics<parallel>], iteration_bounds = array<i64: 2>, scalar_prefetch = 0 : i64, scratch_operands = 0 : i64, tpu.core_type = #tpu.core_type<tc>, window_params = [{transform_indices = @transform_0, window_bounds = array<i64: 1, 4, 256>}, {pipeline_mode = #tpu.pipeline_mode<synchronous>, transform_indices = @transform_1, window_bounds = array<i64: 4, 256>}, {pipeline_mode = #tpu.pipeline_mode<synchronous>, transform_indices = @transform_2, window_bounds = array<i64: 4, 4>}, {pipeline_mode = #tpu.pipeline_mode<synchronous>, transform_indices = @transform_3, window_bounds = array<i64: 4, 1>}, {transform_indices = @transform_4, window_bounds = array<i64: 1, 4, 256>}]} {
    %c0 = arith.constant 0 : index
    %c0_0 = arith.constant 0 : index
    %c0_1 = arith.constant 0 : index
    %0 = vector.load %arg1[%c0, %c0_0, %c0_1] : memref<1x4x256xf32, #tpu.memory_space<vmem>>, vector<1x4x256xf32>
    %c0_2 = arith.constant 0 : index
    %c0_3 = arith.constant 0 : index
    %1 = vector.load %arg2[%c0_2, %c0_3] : memref<4x256xf32, #tpu.memory_space<vmem>>, vector<4x256xf32>
    %2 = vector.extract_strided_slice %1 {offsets = [0, 0], sizes = [1, 256], strides = [1, 1]} : vector<4x256xf32> to vector<1x256xf32>
    %3 = vector.shape_cast %2 : vector<1x256xf32> to vector<1x1x256xf32>
    %4 = vector.extract_strided_slice %1 {offsets = [1, 0], sizes = [1, 256], strides = [1, 1]} : vector<4x256xf32> to vector<1x256xf32>
    %5 = vector.shape_cast %4 : vector<1x256xf32> to vector<1x1x256xf32>
    %6 = vector.extract_strided_slice %1 {offsets = [2, 0], sizes = [1, 256], strides = [1, 1]} : vector<4x256xf32> to vector<1x256xf32>
    %7 = vector.shape_cast %6 : vector<1x256xf32> to vector<1x1x256xf32>
    %8 = vector.extract_strided_slice %1 {offsets = [3, 0], sizes = [1, 256], strides = [1, 1]} : vector<4x256xf32> to vector<1x256xf32>
    %9 = vector.shape_cast %8 : vector<1x256xf32> to vector<1x1x256xf32>
    %c1_i32 = arith.constant 1 : i32
    %10 = tpu.dynamic_rotate %0 by %c1_i32 dim 2 : vector<1x4x256xf32>, i32 -> vector<1x4x256xf32>
    %11 = vector.broadcast %3 : vector<1x1x256xf32> to vector<1x4x256xf32>
    %12 = arith.mulf %10, %11 : vector<1x4x256xf32>
    %c255_i32 = arith.constant 255 : i32
    %13 = tpu.dynamic_rotate %0 by %c255_i32 dim 2 : vector<1x4x256xf32>, i32 -> vector<1x4x256xf32>
    %14 = vector.broadcast %5 : vector<1x1x256xf32> to vector<1x4x256xf32>
    %15 = arith.mulf %13, %14 : vector<1x4x256xf32>
    %16 = arith.addf %0, %12 : vector<1x4x256xf32>
    %17 = arith.addf %16, %15 : vector<1x4x256xf32>
    %c16_i32 = arith.constant 16 : i32
    %18 = tpu.dynamic_rotate %17 by %c16_i32 dim 2 : vector<1x4x256xf32>, i32 -> vector<1x4x256xf32>
    %19 = vector.broadcast %7 : vector<1x1x256xf32> to vector<1x4x256xf32>
    %20 = arith.mulf %18, %19 : vector<1x4x256xf32>
    %c240_i32 = arith.constant 240 : i32
    %21 = tpu.dynamic_rotate %17 by %c240_i32 dim 2 : vector<1x4x256xf32>, i32 -> vector<1x4x256xf32>
    %22 = vector.broadcast %9 : vector<1x1x256xf32> to vector<1x4x256xf32>
    %23 = arith.mulf %21, %22 : vector<1x4x256xf32>
    %24 = arith.addf %17, %20 : vector<1x4x256xf32>
    %25 = arith.addf %24, %23 : vector<1x4x256xf32>
    %cst = arith.constant 0.111111112 : f32
    %26 = vector.broadcast %cst : f32 to vector<1x4x256xf32>
    %27 = arith.mulf %25, %26 : vector<1x4x256xf32>
    %28 = arith.subf %0, %27 : vector<1x4x256xf32>
    %c0_4 = arith.constant 0 : index
    %c0_5 = arith.constant 0 : index
    %29 = vector.load %arg3[%c0_4, %c0_5] : memref<4x4xf32, #tpu.memory_space<vmem>>, vector<4x4xf32>
    %c0_6 = arith.constant 0 : index
    %c0_7 = arith.constant 0 : index
    %30 = vector.load %arg4[%c0_6, %c0_7] : memref<4x1xf32, #tpu.memory_space<vmem>>, vector<4x1xf32>
    %31 = vector.extract_strided_slice %29 {offsets = [0, 0], sizes = [4, 1], strides = [1, 1]} : vector<4x4xf32> to vector<4x1xf32>
    %32 = vector.shape_cast %31 : vector<4x1xf32> to vector<1x4x1xf32>
    %33 = vector.extract_strided_slice %28 {offsets = [0, 0, 0], sizes = [1, 1, 256], strides = [1, 1, 1]} : vector<1x4x256xf32> to vector<1x1x256xf32>
    %34 = vector.broadcast %32 : vector<1x4x1xf32> to vector<1x4x256xf32>
    %35 = vector.broadcast %33 : vector<1x1x256xf32> to vector<1x4x256xf32>
    %36 = arith.mulf %34, %35 : vector<1x4x256xf32>
    %37 = vector.extract_strided_slice %29 {offsets = [0, 1], sizes = [4, 1], strides = [1, 1]} : vector<4x4xf32> to vector<4x1xf32>
    %38 = vector.shape_cast %37 : vector<4x1xf32> to vector<1x4x1xf32>
    %39 = vector.extract_strided_slice %28 {offsets = [0, 1, 0], sizes = [1, 1, 256], strides = [1, 1, 1]} : vector<1x4x256xf32> to vector<1x1x256xf32>
    %40 = vector.broadcast %38 : vector<1x4x1xf32> to vector<1x4x256xf32>
    %41 = vector.broadcast %39 : vector<1x1x256xf32> to vector<1x4x256xf32>
    %42 = arith.mulf %40, %41 : vector<1x4x256xf32>
    %43 = arith.addf %36, %42 : vector<1x4x256xf32>
    %44 = vector.extract_strided_slice %29 {offsets = [0, 2], sizes = [4, 1], strides = [1, 1]} : vector<4x4xf32> to vector<4x1xf32>
    %45 = vector.shape_cast %44 : vector<4x1xf32> to vector<1x4x1xf32>
    %46 = vector.extract_strided_slice %28 {offsets = [0, 2, 0], sizes = [1, 1, 256], strides = [1, 1, 1]} : vector<1x4x256xf32> to vector<1x1x256xf32>
    %47 = vector.broadcast %45 : vector<1x4x1xf32> to vector<1x4x256xf32>
    %48 = vector.broadcast %46 : vector<1x1x256xf32> to vector<1x4x256xf32>
    %49 = arith.mulf %47, %48 : vector<1x4x256xf32>
    %50 = arith.addf %43, %49 : vector<1x4x256xf32>
    %51 = vector.extract_strided_slice %29 {offsets = [0, 3], sizes = [4, 1], strides = [1, 1]} : vector<4x4xf32> to vector<4x1xf32>
    %52 = vector.shape_cast %51 : vector<4x1xf32> to vector<1x4x1xf32>
    %53 = vector.extract_strided_slice %28 {offsets = [0, 3, 0], sizes = [1, 1, 256], strides = [1, 1, 1]} : vector<1x4x256xf32> to vector<1x1x256xf32>
    %54 = vector.broadcast %52 : vector<1x4x1xf32> to vector<1x4x256xf32>
    %55 = vector.broadcast %53 : vector<1x1x256xf32> to vector<1x4x256xf32>
    %56 = arith.mulf %54, %55 : vector<1x4x256xf32>
    %57 = arith.addf %50, %56 : vector<1x4x256xf32>
    %58 = vector.shape_cast %30 : vector<4x1xf32> to vector<1x4x1xf32>
    %59 = vector.broadcast %58 : vector<1x4x1xf32> to vector<1x4x256xf32>
    %60 = arith.addf %57, %59 : vector<1x4x256xf32>
    %cst_8 = arith.constant 0.000000e+00 : f32
    %61 = vector.broadcast %cst_8 : f32 to vector<1x4x256xf32>
    %62 = arith.subf %61, %60 : vector<1x4x256xf32>
    %63 = math.exp %62 : vector<1x4x256xf32>
    %cst_9 = arith.constant 1.000000e+00 : f32
    %64 = vector.broadcast %cst_9 : f32 to vector<1x4x256xf32>
    %65 = arith.addf %64, %63 : vector<1x4x256xf32>
    %cst_10 = arith.constant 1.000000e+00 : f32
    %66 = vector.broadcast %cst_10 : f32 to vector<1x4x256xf32>
    %67 = arith.divf %66, %65 : vector<1x4x256xf32>
    %68 = arith.addf %0, %67 : vector<1x4x256xf32>
    %c0_11 = arith.constant 0 : index
    %c0_12 = arith.constant 0 : index
    %c0_13 = arith.constant 0 : index
    %69 = vector.load %arg5[%c0_11, %c0_12, %c0_13] : memref<1x4x256xf32, #tpu.memory_space<vmem>>, vector<1x4x256xf32>
    tpu.vector_store %arg5[%c0_11, %c0_12, %c0_13], %68 {strides = array<i32>} : memref<1x4x256xf32, #tpu.memory_space<vmem>>, vector<1x4x256xf32>,
    return
  }
  func.func @transform_0(%arg0: i32) -> (i32, i32, i32) {
    %c0_i32 = arith.constant 0 : i32
    %c0_i32_0 = arith.constant 0 : i32
    %c0_i32_1 = arith.constant 0 : i32
    return %arg0, %c0_i32, %c0_i32_0 : i32, i32, i32
  }
  func.func @transform_1(%arg0: i32) -> (i32, i32) {
    %c0_i32 = arith.constant 0 : i32
    %c0_i32_0 = arith.constant 0 : i32
    %c0_i32_1 = arith.constant 0 : i32
    return %c0_i32, %c0_i32_0 : i32, i32
  }
  func.func @transform_2(%arg0: i32) -> (i32, i32) {
    %c0_i32 = arith.constant 0 : i32
    %c0_i32_0 = arith.constant 0 : i32
    %c0_i32_1 = arith.constant 0 : i32
    return %c0_i32, %c0_i32_0 : i32, i32
  }
  func.func @transform_3(%arg0: i32) -> (i32, i32) {
    %c0_i32 = arith.constant 0 : i32
    %c0_i32_0 = arith.constant 0 : i32
    %c0_i32_1 = arith.constant 0 : i32
    return %c0_i32, %c0_i32_0 : i32, i32
  }
  func.func @transform_4(%arg0: i32) -> (i32, i32, i32) {
    %c0_i32 = arith.constant 0 : i32
    %c0_i32_0 = arith.constant 0 : i32
    %c0_i32_1 = arith.constant 0 : i32
    return %arg0, %c0_i32, %c0_i32_0 : i32, i32, i32
  }
}

</mosaic_0001>

<bundles_post_ra>
// kernel: tpu_custom_call.1
= control target key start
LH: loop header
LB: loop body
LE: loop exit
PB: predicated region body
PF: predicated region fallthrough
CT: control target
= control target key end

     0   :  { %9 = vsyncpa [#allocation3], 0  ;;  %s1022_s0 = inlined_call_operand.hbm [shape: f32[2,4,256], index: 0, kind: input, shape index: {}]   ;;  %s1023_s1 = inlined_call_operand.vmem [shape: f32[4,256], index: 1, kind: input, shape index: {}]   ;;  %s1024_s2 = inlined_call_operand.vmem [shape: f32[4,4], index: 2, kind: input, shape index: {}]   ;;  %s1025_s3 = inlined_call_operand.vmem [shape: f32[4,1], index: 3, kind: input, shape index: {}]   ;;  %s1026_s4 = inlined_call_operand.hbm [shape: f32[2,4,256], index: 4, kind: output, shape index: {}]  }
   0x1   :  { %11 = vsyncpa [#allocation3 + $0x1], 0 }
   0x2   :  { %12 = vsyncpa [#allocation4], 0 }
   0x3   :  { %14 = vsyncpa [#allocation4 + $0x1], 0  ;;  %s789_s15 = smov 0   ;;  %s791_s16 = smov 0  }
   0x4   :  { %s793_s17 = smov 0   ;;  %s795_s18 = smov 0  }
   0x5 LB: > { %s810_s19 = sadd.s32 4294967295, %s752_s18   ;;  %s571_s20 = sadd.s32 4294967294, %s752_s18   ;;  %s752_s18 = sphi %s795_s18, %s1041_s18   ;;  %s748_s17 = sphi %s793_s17, %s1040_s17   ;;  %s744_s16 = sphi %s791_s16, %s1039_s16   ;;  %s740_s15 = sphi %s789_s15, %s1038_s15  }
   0x6   : > { %s814_s21 = sadd.s32 1, %s752_s18   ;;  %s27_s22 = sadd.s32 1, %s748_s17 }
   0x7   : > { %s24_s23 = ssub.s32 %s752_s18, %s814_s21  ;;  %p34_p0 = scmp.ne.s32.totalorder %s748_s17, %s744_s16 }
   0x8   : > { %p25_p1 = scmp.eq.s32.totalorder %s24_s23, 0  ;;  %p35_p2 = scmp.eq.s32.totalorder %s752_s18, 0 }
   0x9   : > { %p40_p3 = scmp.ne.s32.totalorder %s744_s16, %s740_s15  ;;  %p41_p4 = scmp.eq.s32.totalorder %s810_s19, 0 }
   0xa   : > { %s826_s24 = scalar_select %p25_p1, %s748_s17, %s27_s22  }
   0xb   : > { %p828_p5 = por %p35_p2, %p34_p0  ;;  %p832_p6 = por %p41_p4, %p40_p3 }
   0xc   : > { %p127_p7 = scmp.eq.s32.totalorder %s810_s19, 1  ;;  %p133_p8 = scmp.eq.s32.totalorder %s571_s20, 1 }
   0xd   : > { %p599_p10 = scmp.lt.s32.totalorder %s752_s18, 2  ;;  %s162_s29 = sand.u32 1, %s748_s17  }
   0xe   : > { %p839_p11 = por %p127_p7, %p34_p0  ;;  %p843_p12 = por %p133_p8, %p40_p3 }
   0xf   : > { %s585_s30 = sshll.u32 %s752_s18, 7  ;;  %s574_s5 = sshll.u32 %s162_s29, 3 }
  0x10   : > { %s1030_s27 = scalar_select %p839_p11, 1, 0 }
  0x11   : > { %s1031_s28 = scalar_select %p843_p12, 1, 0 }
  0x12   : > { %s852_s8 = scalar_lea.hbm %s1022_s0, %s585_s30  ;;  %s166_s9 = scalar_lea.vmem [#allocation2], %s574_s5 }
  0x13   : > { %s174_s10 = sshll.u32 %s166_s9, 4  ;;  %p856_p13 = pnand %p599_p10, %p828_p5  ;;  %s860_s10 = int_to_ptr.vmem [resolvable:$true] %s174_s10 }
  0x14   : > { %s163_s12 = scalar_lea.sflag [#allocation3], %s162_s29  ;;  %s656_s13 = scalar_lea.hbm %s852_s8, 128 }
  0x15   : > { %p657_p2 = scmp.ne.s32.totalorder %s852_s8, %s656_s13  ;;  %p658_p3 = pneg %p856_p13 }
  0x16   : > { %s661_s22 = scalar_lea.hbm %s1022_s0, 256  ;;  %p662_p5 = scmp.lt.u32.totalorder %s852_s8, %s1022_s0 }
  0x17   : > { %p659_p4 = pnand %p658_p3, %p657_p2  ;;  %p663_p8 = scmp.lt.u32.totalorder %s661_s22, %s656_s13 }
  0x18   : > { %p665_p9 = scmp.lt.u32.totalorder %s656_s13, %s852_s8 }
  0x19   : > { %p660_p7 = pneg %p659_p4  ;;  %p664_p10 = por %p663_p8, %p662_p5 }
  0x1b   : > { %p666_p0 = por %p665_p9, %p664_p10 }
  0x1d   : > { %p667_p1 = pnand %p666_p0, %p660_p7 }
  0x1f   : > { %670 = shalt.err (!%p667_p1)
}
  0x20   : > { %s671_s29 = scalar_lea.vmem %s860_s10, 128  ;;  %s754_s30 = smov [#allocation2]  }
  0x21   : > { %p672_p2 = scmp.ne.s32.totalorder %s860_s10, %s671_s29  ;;  %s676_s5 = sshll.u32 %s754_s30, 4  ;;  %s677_s5 = int_to_ptr.vmem [resolvable:$false] %s676_s5 }
  0x22   : > { %s678_s6 = scalar_lea.vmem %s677_s5, 256  ;;  %p679_p11 = scmp.lt.s32.totalorder %s860_s10, %s677_s5 }
  0x23   : > { %p674_p4 = pnand %p672_p2, %p658_p3  ;;  %p680_p5 = scmp.lt.s32.totalorder %s678_s6, %s671_s29 }
  0x25   : > { %p675_p12 = pneg %p674_p4  ;;  %p681_p8 = por %p680_p5, %p679_p11 }
  0x27   : > { %p682_p9 = pnand %p681_p8, %p675_p12 }
  0x29   : > { %685 = shalt.err (!%p682_p9)
}
  0x2a   : > { %594 = dma.hbm_to_vmem [thread:$0]  (!%p856_p13), %s852_s8, 128, %s860_s10, %s163_s12  }
  0x2b   : > { %p1033_p0 = scmp.lt.s32.totalorder %s752_s18, 3  ;;  %p1034_p1 = scmp.ge.s32.totalorder %s752_s18, 1 }
  0x2d   : > { %p180_p3 = pnand %p1034_p1, %p1033_p0 }
  0x2e   : > { %s894_s7 = sand.u32 (!%p180_p3), 1, %s744_s16  }
  0x2f   : > { %183 = sbr.rel (%p180_p3) target bundleno = 382 (0x17e), region = 36  ;;  %s578_s9 = sshll.u32 (!%p180_p3), %s894_s7, 3 }
  0x30   : > { %s186_s13 = scalar_lea.sflag (!%p180_p3), [#allocation3], %s894_s7  ;;  %s189_s11 = scalar_lea.vmem (!%p180_p3), [#allocation2], %s578_s9 }
  0x36   : > { %731 = dma.done.wait (%p832_p6), %s186_s13, 128  }
  0x37   : > { %733 = vsyncadd (%p832_p6), %s186_s13, 4294967168  ;;  %v904_v0 = vld [vmem:[%s189_s11] sm:$0xff]  ;;  %s755_s8 = smov 127   ;;  %s756_s10 = smov 1   ;;  %v757_v2 = vmov 0   ;;  %v758_v3 = vmov 1   ;;  %v223_v4 = vlaneseq }
  0x38   : > { %249 = vrot.lane.b32.xlu1 %v904_v0, %s755_s8  ;;  %219 = vrot.lane.b32.xlu0 %v904_v0, %s756_s10  ;;  %v217_v1 = vcombine.high %v904_v0, %v904_v0  ;;  %v923_v10 = vld [vmem:[%s1023_s1] sm:$0xff]  ;;  %s759_s14 = smov 16   ;;  %s760_s20 = smov 112   ;;  %v761_v38 = vmov 3   ;;  %v762_v39 = vmov 2  }
  0x39   : > { %641 = vset.pattern.permute.xlu0 %v757_v2  ;;  %642 = vset.pattern.permute.xlu1 %v758_v3  ;;  %v910_v5 = vshrl.u32 %v223_v4, 7  ;;  %v925_v11 = vand.u32 127, %v223_v4  ;;  %v355_v37 = vld [vmem:[%s1024_s2] sm:$0xf]  ;;  %s586_s30 = sshll.u32 %s810_s19, 7  ;;  %s213_s5 = scalar_lea.vmem [#allocation5], %s578_s9 }
  0x3a   : > { %v356_v40 = vld [vmem:[%s1025_s3] sm:$0xf]  ;;  %s501_s6 = sshll.u32 %s213_s5, 4  ;;  %p1035_p11 = scmp.ne.s32.totalorder %s1030_s27, 0  ;;  %s980_s6 = int_to_ptr.vmem [resolvable:$true] %s501_s6 }
  0x3b   : > { %v913_v6 = vsub.s32 1, %v910_v5  ;;  %v262_v7 = vsub.s32 5, %v910_v5  ;;  %v917_v8 = vsub.s32 0, %v910_v5  ;;  %v235_v9 = vsub.s32 4, %v910_v5  ;;  %s686_s26 = scalar_lea.vmem %s980_s6, 128  ;;  %s763_s19 = smov [#allocation5]  }
  0x3c   : > { %251 = vrot.lane.b32.xlu1 %v217_v1, %s755_s8  ;;  %221 = vrot.lane.b32.xlu0 %v217_v1, %s756_s10  ;;  %vm253_vm0 = vcmp.lt.s32.totalorder %v925_v11, 127  ;;  %vm225_vm1 = vcmp.lt.s32.totalorder %v925_v11, 1  ;;  %v298_v41 = vsub.s32 2, %v910_v5  ;;  %v302_v42 = vsub.s32 6, %v910_v5  ;;  %s978_s8 = scalar_lea.hbm %s1026_s4, %s586_s30  ;;  %s487_s10 = scalar_lea.sflag [#allocation4], %s894_s7 }
  0x3d   : > { %v259_v12 = vrot.slane %v923_v10, %v913_v6  ;;  %v263_v13 = vrot.slane %v923_v10, %v262_v7  ;;  %v232_v14 = vrot.slane %v923_v10, %v917_v8  ;;  %v236_v15 = vrot.slane %v923_v10, %v235_v9  ;;  %p687_p6 = scmp.ne.s32.totalorder %s980_s6, %s686_s26  ;;  %s690_s9 = sshll.u32 %s763_s19, 4  ;;  %s691_s9 = int_to_ptr.vmem [resolvable:$false] %s690_s9 }
  0x3e   : > { %v299_v43 = vrot.slane %v923_v10, %v298_v41  ;;  %v303_v44 = vrot.slane %v923_v10, %v302_v42  ;;  %v325_v45 = vsub.s32 3, %v910_v5  ;;  %v329_v46 = vsub.s32 7, %v910_v5  ;;  %s692_s12 = scalar_lea.vmem %s691_s9, 256  ;;  %p693_p7 = scmp.lt.s32.totalorder %s980_s6, %s691_s9 }
  0x3f   : > { %v269_v18 = vrot.slane %v259_v12, %v913_v6  ;;  %v273_v19 = vrot.slane %v263_v13, %v913_v6  ;;  %v242_v20 = vrot.slane %v232_v14, %v917_v8  ;;  %v246_v21 = vrot.slane %v236_v15, %v917_v8  ;;  %p688_p12 = pnand %p687_p6, %p1035_p11  ;;  %p694_p10 = scmp.lt.s32.totalorder %s692_s12, %s686_s26 }
  0x40   : > { %vm293_vm2 = vcmp.lt.s32.totalorder %v925_v11, 16  ;;  %v309_v48 = vrot.slane %v299_v43, %v298_v41  ;;  %v313_v49 = vrot.slane %v303_v44, %v298_v41  ;;  %v326_v50 = vrot.slane %v923_v10, %v325_v45 }
  0x41   : > { %v330_v51 = vrot.slane %v923_v10, %v329_v46  ;;  %vm320_vm3 = vcmp.lt.s32.totalorder %v925_v11, 112  ;;  %p689_p13 = pneg %p688_p12  ;;  %p695_p2 = por %p694_p10, %p693_p7 }
  0x42   : > { %v336_v57 = vrot.slane %v326_v50, %v325_v45 }
  0x43   : > { %v340_v58 = vrot.slane %v330_v51, %v325_v45  ;;  %p696_p4 = pnand %p695_p2, %p689_p13 }
  0xaa   : > { %v250_v16 = vpop.permute.xlu1 %249  ;;  %v220_v17 = vpop.permute.xlu0 %219 }
  0xae   : > { %v252_v22 = vpop.permute.xlu1 %251  ;;  %v222_v23 = vpop.permute.xlu0 %221 }
  0xaf   : > { %v254_v24 = vsel %vm253_vm0, %v250_v16, %v252_v22  ;;  %v255_v25 = vsel %vm253_vm0, %v252_v22, %v250_v16  ;;  %v226_v26 = vsel %vm225_vm1, %v220_v17, %v222_v23  ;;  %v227_v27 = vsel %vm225_vm1, %v222_v23, %v220_v17 }
  0xb0   : > { %v274_v28 = vmul.f32 %v269_v18, %v254_v24  ;;  %v275_v29 = vmul.f32 %v273_v19, %v255_v25  ;;  %v247_v30 = vmul.f32 %v242_v20, %v227_v27  ;;  %v248_v31 = vmul.f32 %v246_v21, %v226_v26 }
  0xb2   : > { %v278_v32 = vcombine.low %v247_v30, %v248_v31  ;;  %v283_v33 = vcombine.low %v274_v28, %v275_v29 }
  0xb4   : > { %v280_v34 = vadd.f32 %v278_v32, %v904_v0 }
  0xb6   : > { %v285_v35 = vadd.f32 %v283_v33, %v280_v34 }
  0xb8   : > { %289 = vrot.lane.b32.xlu0 %v285_v35, %s759_s14  ;;  %v287_v36 = vcombine.high %v285_v35, %v285_v35 }
  0xba   : > { %291 = vrot.lane.b32.xlu1 %v287_v36, %s759_s14 }
  0xbc   : > { %316 = vrot.lane.b32.xlu0 %v285_v35, %s760_s20 }
  0xbe   : > { %318 = vrot.lane.b32.xlu1 %v287_v36, %s760_s20 }
  0xc0   : > { %359 = vperm.xlu0 %641, %v355_v37  }
  0xc2   : > { %384 = vperm.xlu1 %642, %v355_v37  }
  0xc4   : > { %644 = vset.pattern.permute.xlu0 %v761_v38 }
  0xc5   : > { %436 = vperm.xlu0 %644, %v355_v37  }
  0xc6   : > { %643 = vset.pattern.permute.xlu1 %v762_v39 }
  0xc7   : > { %410 = vperm.xlu1 %643, %v355_v37  }
  0xc9   : > { %646 = vset.pattern.permute.xlu0 %v757_v2 }
  0xcb   : > { %645 = vset.pattern.permute.xlu1 %v757_v2 }
  0xcc   : > { %463 = vperm.xlu1 %645, %v356_v40  }
 0x12a   : > { %v290_v47 = vpop.permute.xlu0 %289 }
 0x12c   : > { %v292_v52 = vpop.permute.xlu1 %291 }
 0x12d   : > { %v294_v53 = vsel %vm293_vm2, %v290_v47, %v292_v52  ;;  %v295_v54 = vsel %vm293_vm2, %v292_v52, %v290_v47 }
 0x12e   : > { %v314_v55 = vmul.f32 %v309_v48, %v295_v54  ;;  %v315_v56 = vmul.f32 %v313_v49, %v294_v53  ;;  %v317_v60 = vpop.permute.xlu0 %316 }
 0x130   : > { %v345_v59 = vcombine.low %v314_v55, %v315_v56  ;;  %v319_v61 = vpop.permute.xlu1 %318 }
 0x131   : > { %v321_v62 = vsel %vm320_vm3, %v317_v60, %v319_v61  ;;  %v322_v63 = vsel %vm320_vm3, %v319_v61, %v317_v60 }
 0x132   : > { %v341_v1 = vmul.f32 %v336_v57, %v321_v62  ;;  %v342_v2 = vmul.f32 %v340_v58, %v322_v63  ;;  %v347_v3 = vadd.f32 %v345_v59, %v285_v35 }
 0x134   : > { %v350_v4 = vcombine.low %v341_v1, %v342_v2 }
 0x136   : > { %v352_v12 = vadd.f32 %v350_v4, %v347_v3 }
 0x138   : > { %v353_v10 = vmul.f32 0.11111111, %v352_v12 }
 0x13a   : > { %v354_v13 = vsub.f32 %v904_v0, %v353_v10 }
 0x13c   : > { %v366_v14 = vrot.slane %v354_v13, %v917_v8  ;;  %v370_v11 = vrot.slane %v354_v13, %v235_v9  ;;  %v390_v15 = vrot.slane %v354_v13, %v913_v6  ;;  %v394_v16 = vrot.slane %v354_v13, %v262_v7 }
 0x13d   : > { %v416_v18 = vrot.slane %v354_v13, %v298_v41  ;;  %v420_v19 = vrot.slane %v354_v13, %v302_v42  ;;  %v442_v25 = vrot.slane %v354_v13, %v325_v45  ;;  %v446_v26 = vrot.slane %v354_v13, %v329_v46 }
 0x13e   : > { %v376_v20 = vrot.slane %v366_v14, %v917_v8  ;;  %v380_v21 = vrot.slane %v370_v11, %v917_v8  ;;  %v400_v22 = vrot.slane %v390_v15, %v913_v6  ;;  %v404_v23 = vrot.slane %v394_v16, %v913_v6 }
 0x13f   : > { %v360_v17 = vpop.permute.xlu0 %359  ;;  %v426_v5 = vrot.slane %v416_v18, %v298_v41  ;;  %v430_v7 = vrot.slane %v420_v19, %v298_v41  ;;  %v452_v31 = vrot.slane %v442_v25, %v325_v45  ;;  %v456_v32 = vrot.slane %v446_v26, %v325_v45 }
 0x140   : > { %v381_v28 = vmul.f32 %v376_v20, %v360_v17  ;;  %v382_v29 = vmul.f32 %v380_v21, %v360_v17 }
 0x141   : > { %v385_v24 = vpop.permute.xlu1 %384 }
 0x142   : > { %v405_v9 = vmul.f32 %v400_v22, %v385_v24  ;;  %v406_v27 = vmul.f32 %v404_v23, %v385_v24 }
 0x144   : > { %v437_v30 = vpop.permute.xlu0 %436  ;;  %v407_v34 = vadd.f32 %v405_v9, %v381_v28  ;;  %v408_v35 = vadd.f32 %v406_v27, %v382_v29 }
 0x145   : > { %v457_v37 = vmul.f32 %v452_v31, %v437_v30  ;;  %v458_v38 = vmul.f32 %v456_v32, %v437_v30 }
 0x146   : > { %v411_v33 = vpop.permute.xlu1 %410 }
 0x147   : > { %v431_v8 = vmul.f32 %v426_v5, %v411_v33  ;;  %v432_v36 = vmul.f32 %v430_v7, %v411_v33 }
 0x149   : > { %v433_v6 = vadd.f32 %v431_v8, %v407_v34  ;;  %v434_v39 = vadd.f32 %v432_v36, %v408_v35 }
 0x14b   : > { %v459_v40 = vadd.f32 %v457_v37, %v433_v6  ;;  %v460_v42 = vadd.f32 %v458_v38, %v434_v39  ;;  %v464_v43 = vpop.permute.xlu1 %463 }
 0x14d   : > { %v466_v44 = vadd.f32 %v464_v43, %v459_v40  ;;  %v467_v46 = vadd.f32 %v464_v43, %v460_v42 }
 0x14f   : > { %v468_v41 = vsub.f32 0.0, %v466_v44  ;;  %v469_v47 = vsub.f32 0.0, %v467_v46 }
 0x151   : > { %v470_v48 = vmul.f32 1.442695, %v468_v41  ;;  %v472_v45 = vmul.f32 1.442695, %v469_v47 }
 0x153   : > { %648 = vpow2.f32 %v470_v48 }
 0x154   : > { %650 = vpow2.f32 %v472_v45 }
 0x15d   : > { %v649_v49 = vpop.eup %648 }
 0x15e   : > { %v651_v50 = vpop.eup %650  ;;  %v474_v51 = vadd.f32 1.0, %v649_v49 }
 0x15f   : > { %v475_v52 = vadd.f32 1.0, %v651_v50 }
 0x160   : > { %652 = vrcp.f32 %v474_v51 }
 0x161   : > { %654 = vrcp.f32 %v475_v52 }
 0x16a   : > { %v653_v53 = vpop.eup %652 }
 0x16b   : > { %v655_v54 = vpop.eup %654 }
 0x16c   : > { %v482_v55 = vcombine.low %v653_v53, %v655_v54 }
 0x16e   : > { %v484_v56 = vadd.f32 %v482_v55, %v904_v0 }
 0x170   : > { %485 = vst [vmem:[%s213_s5] sm:$0xff] %v484_v56 }
 0x171   : > { %699 = shalt.err (!%p696_p4)
}
 0x172   : > { %s700_s7 = scalar_lea.hbm %s978_s8, 128  ;;  %s704_s22 = scalar_lea.hbm %s1026_s4, 256 }
 0x173   : > { %p701_p5 = scmp.ne.s32.totalorder %s978_s8, %s700_s7  ;;  %p705_p0 = scmp.lt.u32.totalorder %s978_s8, %s1026_s4 }
 0x174   : > { %p706_p1 = scmp.lt.u32.totalorder %s704_s22, %s700_s7  ;;  %p708_p6 = scmp.lt.u32.totalorder %s700_s7, %s978_s8 }
 0x175   : > { %p702_p8 = pnand %p701_p5, %p1035_p11 }
 0x176   : > { %p707_p3 = por %p706_p1, %p705_p0 }
 0x177   : > { %p703_p9 = pneg %p702_p8 }
 0x178   : > { %p709_p12 = por %p708_p6, %p707_p3 }
 0x17a   : > { %p710_p13 = pnand %p709_p12, %p703_p9 }
 0x17c   : > { %713 = shalt.err (!%p710_p13)
}
 0x17d   : > { %589 = dma.vmem_to_hbm [thread:$0]  (%p1035_p11), %s980_s6, 128, %s978_s8, %s487_s10  }
 0x17e PF: > { %s513_s29 = sand.u32 1, %s740_s15   ;;  %p1036_p7 = scmp.ne.s32.totalorder %s1031_s28, 0 }
 0x17f   : > { %p1037_p10 = scmp.ge.s32.totalorder %s752_s18, 2  ;;  %s514_s30 = scalar_lea.sflag [#allocation4], %s513_s29 }
 0x181   : > { %p596_p2 = pnand %p1037_p10, %p1036_p7 }
 0x183   : > { %735 = dma.done.wait (!%p596_p2), %s514_s30, 128  }
 0x184   : > { %737 = vsyncadd (!%p596_p2), %s514_s30, 4294967168  ;;  %p17_p4 = scmp.ge.s32.totalorder %s814_s21, 4   ;;  %s1038_s15 = smov %s744_s16 }
 0x185   : > { %s1039_s16 = smov %s748_s17  ;;  %s1040_s17 = smov %s826_s24 }
 0x186   : > { %s1041_s18 = smov %s814_s21  ;;  %19 = sbr.rel (!%p17_p4) target bundleno = 5 (0x5), region = 81 }
 0x18d   :  { %519 = vsyncpa [#allocation3], 1 }
 0x18e   :  { %521 = vsyncpa [#allocation3 + $0x1], 1 }
 0x18f   :  { %522 = vsyncpa [#allocation4], 1 }
 0x190   :  { %524 = vsyncpa [#allocation4 + $0x1], 1 }

</bundles_post_ra>
